<compile_context>
chip_gen: v6e
topology: v6e:2x2x1
jax: 0.10.0
libtpu: 0.0.40
codegen_flags: <defaults>
</compile_context>

<pallas_src>
import jax
import jax.numpy as jnp
from jax.experimental import pallas as pl
from jax.experimental.pallas import tpu as pltpu


def _round_up(n: int, m: int) -> int:
    return ((n + m - 1) // m) * m


def _logreg_kernel(x_ref, w_ref, b_ref, o_ref):
    # x_ref: (TB, D) f32 VMEM   w_ref: (1, D) f32 VMEM (resident)
    # b_ref: (1,)    f32 SMEM   o_ref: (TB, 1) f32 VMEM
    x = x_ref[...]
    w = w_ref[...]                                   # (1, D), broadcasts over TB
    # VPU multiply + XLU lane-reduce instead of an MXU matvec with width-1 output.
    z = jnp.sum(x * w, axis=-1, keepdims=True) + b_ref[0]
    # sigmoid: exp on EUP, approx reciprocal also on EUP (VALU stays free).
    o_ref[...] = pl.reciprocal(1.0 + jnp.exp(-z), approx=True)


def logistic_regression_forward(x, w_row, b, *, block_b: int = 1024):
    """x: (B, D) f32, w_row: (1, D) f32, b: (1,) f32 -> (B, 1) f32."""
    B, D = x.shape
    assert w_row.shape == (1, D) and b.shape == (1,)

    # Batch tile: multiple of 8 (sublane), clamped to the (padded) batch.
    tb = min(block_b, _round_up(B, 8))
    tb = _round_up(tb, 8)

    # Pad the batch so B % TB == 0; padded rows compute sigmoid(bias) and are
    # sliced off below, so no tail masking is needed in the kernel.
    Bp = _round_up(B, tb)
    if Bp != B:
        x = jnp.pad(x, ((0, Bp - B), (0, 0)))

    out = pl.pallas_call(
        _logreg_kernel,
        out_shape=jax.ShapeDtypeStruct((Bp, 1), jnp.float32),
        grid=(Bp // tb,),
        in_specs=[
            pl.BlockSpec((tb, D), lambda i: (i, 0)),               # x: streamed
            pl.BlockSpec((1, D), lambda i: (0, 0)),                # w: resident
            pl.BlockSpec(memory_space=pltpu.MemorySpace.SMEM),     # b: scalar
        ],
        out_specs=pl.BlockSpec((tb, 1), lambda i: (i, 0)),
        compiler_params=pltpu.CompilerParams(
            dimension_semantics=("parallel",),
        ),
    )(x, w_row, b)

    return out[:B]


def _reference(x, w_row, b):
    return jax.nn.sigmoid(x @ w_row.T + b[None, :])


if __name__ == "__main__":
    # Sizes consistent with the module: income-dataset-style feature count,
    # output_dim = 1.
    input_dim = 14
    output_dim = 1

    key = jax.random.PRNGKey(0)
    kx, kw, kb, kx2 = jax.random.split(key, 4)

    # PyTorch nn.Linear default init: U(-1/sqrt(in), 1/sqrt(in)).
    bound = 1.0 / jnp.sqrt(jnp.float32(input_dim))
    w_torch = jax.random.uniform(
        kw, (output_dim, input_dim), dtype=jnp.float32, minval=-bound, maxval=bound
    )
    b_torch = jax.random.uniform(
        kb, (output_dim,), dtype=jnp.float32, minval=-bound, maxval=bound
    )
    w_row = w_torch                    # (1, D) row layout used by the kernel
    b = b_torch                        # (1,)

    # --- small shape, single tile ---
    batch = 8
    x = jax.random.normal(kx, (batch, input_dim), dtype=jnp.float32)
    out = jax.block_until_ready(logistic_regression_forward(x, w_row, b))
    ref = _reference(x, w_row, b)
    assert out.shape == (batch, output_dim)
    assert jnp.allclose(out, ref, atol=2e-3, rtol=2e-3)

    # --- non-multiple-of-tile batch: exercises tiling + tail padding ---
    batch2 = 300
    x2 = jax.random.normal(kx2, (batch2, input_dim), dtype=jnp.float32)
    out2 = jax.block_until_ready(
        logistic_regression_forward(x2, w_row, b, block_b=128)
    )
    ref2 = _reference(x2, w_row, b)
    assert out2.shape == (batch2, output_dim)
    assert jnp.allclose(out2, ref2, atol=2e-3, rtol=2e-3)

    print("KERNEL_OK")
</pallas_src>

<mosaic_0001>
module attributes {stable_mosaic.version = 11 : i64} {
  func.func @_logreg_kernel(%arg0: i32, %arg1: memref<8x14xf32, #tpu.memory_space<vmem>>, %arg2: memref<1x14xf32, #tpu.memory_space<vmem>>, %arg3: memref<1xf32, #tpu.memory_space<smem>>, %arg4: memref<8x1xf32, #tpu.memory_space<vmem>>) attributes {dimension_semantics = [#tpu.dimension_semantics<parallel>], iteration_bounds = array<i64: 1>, scalar_prefetch = 0 : i64, scratch_operands = 0 : i64, tpu.core_type = #tpu.core_type<tc>, window_params = [{transform_indices = @transform_0, window_bounds = array<i64: 8, 14>}, {pipeline_mode = #tpu.pipeline_mode<synchronous>, transform_indices = @transform_1, window_bounds = array<i64: 1, 14>}, {transform_indices = @transform_2, window_bounds = array<i64: 1>}, {transform_indices = @transform_3, window_bounds = array<i64: 8, 1>}]} {
    %c0 = arith.constant 0 : index
    %c0_0 = arith.constant 0 : index
    %0 = vector.load %arg1[%c0, %c0_0] : memref<8x14xf32, #tpu.memory_space<vmem>>, vector<8x14xf32>
    %c0_1 = arith.constant 0 : index
    %c0_2 = arith.constant 0 : index
    %1 = vector.load %arg2[%c0_1, %c0_2] : memref<1x14xf32, #tpu.memory_space<vmem>>, vector<1x14xf32>
    %2 = vector.broadcast %1 : vector<1x14xf32> to vector<8x14xf32>
    %3 = arith.mulf %0, %2 : vector<8x14xf32>
    %cst = arith.constant dense<0.000000e+00> : vector<8xf32>
    %4 = vector.multi_reduction <add>, %3, %cst [1] : vector<8x14xf32> to vector<8xf32>
    %5 = vector.shape_cast %4 : vector<8xf32> to vector<8x1xf32>
    %c0_3 = arith.constant 0 : index
    %6 = memref.load %arg3[%c0_3] : memref<1xf32, #tpu.memory_space<smem>>
    %7 = vector.broadcast %6 : f32 to vector<8x1xf32>
    %8 = arith.addf %5, %7 : vector<8x1xf32>
    %cst_4 = arith.constant 0.000000e+00 : f32
    %9 = vector.broadcast %cst_4 : f32 to vector<8x1xf32>
    %10 = arith.subf %9, %8 : vector<8x1xf32>
    %11 = math.exp %10 : vector<8x1xf32>
    %cst_5 = arith.constant 1.000000e+00 : f32
    %12 = vector.broadcast %cst_5 : f32 to vector<8x1xf32>
    %13 = arith.addf %12, %11 : vector<8x1xf32>
    %14 = tpu.reciprocal %13 {approx = true} : vector<8x1xf32> -> vector<8x1xf32>
    %c0_6 = arith.constant 0 : index
    %c0_7 = arith.constant 0 : index
    %15 = vector.load %arg4[%c0_6, %c0_7] : memref<8x1xf32, #tpu.memory_space<vmem>>, vector<8x1xf32>
    tpu.vector_store %arg4[%c0_6, %c0_7], %14 {strides = array<i32>} : memref<8x1xf32, #tpu.memory_space<vmem>>, vector<8x1xf32>,
    return
  }
  func.func @transform_0(%arg0: i32) -> (i32, i32) {
    %c0_i32 = arith.constant 0 : i32
    %c0_i32_0 = arith.constant 0 : i32
    return %arg0, %c0_i32 : i32, i32
  }
  func.func @transform_1(%arg0: i32) -> (i32, i32) {
    %c0_i32 = arith.constant 0 : i32
    %c0_i32_0 = arith.constant 0 : i32
    %c0_i32_1 = arith.constant 0 : i32
    return %c0_i32, %c0_i32_0 : i32, i32
  }
  func.func @transform_2(%arg0: i32) -> i32 {
    %c0_i32 = arith.constant 0 : i32
    %c0_i32_0 = arith.constant 0 : i32
    return %c0_i32 : i32
  }
  func.func @transform_3(%arg0: i32) -> (i32, i32) {
    %c0_i32 = arith.constant 0 : i32
    %c0_i32_0 = arith.constant 0 : i32
    return %arg0, %c0_i32 : i32, i32
  }
}

</mosaic_0001>

<bundles_post_ra>
// kernel: tpu_custom_call.1
= control target key start
LH: loop header
LB: loop body
LE: loop exit
PB: predicated region body
PF: predicated region fallthrough
CT: control target
= control target key end

     0   :  { %9 = vsyncpa [#allocation4], 0  ;;  %s83_s12 = smov [#allocation3]   ;;  %s116_s0 = inlined_call_operand.hbm [shape: f32[8,14], index: 0, kind: input, shape index: {}]   ;;  %s117_s1 = inlined_call_operand.vmem [shape: f32[1,14], index: 1, kind: input, shape index: {}]   ;;  %s118_s2 = inlined_call_operand.<no memory space> [shape: f32[1], index: 2, kind: input, shape index: {}]   ;;  %s119_s3 = inlined_call_operand.vmem [shape: f32[8,1], index: 3, kind: output, shape index: {}]  }
   0x1   :  { %s16_s13 = sshll.u32 %s83_s12, 4  ;;  %s17_s13 = int_to_ptr.vmem [resolvable:$true] %s16_s13 }
   0x2   :  { %s69_s14 = scalar_lea.vmem %s17_s13, 128  ;;  %p74_p1 = scmp.lt.s32.totalorder %s17_s13, %s17_s13 }
   0x3   :  { %p70_p0 = scmp.ne.s32.totalorder %s17_s13, %s69_s14  ;;  %p75_p2 = scmp.lt.s32.totalorder %s69_s14, %s69_s14 }
   0x5   :  { %p76_p3 = por %p75_p2, %p74_p1 }
   0x7   :  { %p77_p4 = pnand %p76_p3, %p70_p0 }
   0x9   :  { %80 = shalt.err (!%p77_p4)
}
   0xa   :  { %19 = dma.hbm_to_vmem [thread:$0]  %s116_s0, 128, %s17_s13, [#allocation4]  }
   0xb   :  { %81 = dma.done.wait [#allocation4], 128  }
   0xc   :  { %82 = vsyncadd [#allocation4], 4294967168  ;;  %v27_v0 = vld [vmem:[#allocation3] sm:$0xff]  ;;  %vm36_vm0 = vcmask 113664   ;;  %v41_v4 = vstv %s118_s2  ;;  %vm48_vm1 = vcmask 7168  }
   0xd   :  { %v55_v1 = vld [vmem:[%s117_s1] ss:$0 sm:$0xff] }
   0xe   :  { %v35_v2 = vmul.f32 %v55_v1, %v27_v0 }
  0x10   :  { %v37_v3 = vsel %vm36_vm0, %v35_v2, 0.0 }
  0x11   :  { %38 = vadd.xlane.f32.xlu0 %v37_v3 }
  0x9a   :  { %v39_v5 = vpop.xlane.xlu0 %38 }
  0x9b   :  { %v42_v6 = vadd.f32 %v41_v4, %v39_v5 }
  0x9d   :  { %v43_v7 = vsub.f32 0.0, %v42_v6 }
  0x9f   :  { %v44_v8 = vmul.f32 1.442695, %v43_v7 }
  0xa1   :  { %57 = vpow2.f32 %v44_v8 }
  0xae   :  { %v58_v9 = vpop.eup %57 }
  0xaf   :  { %v46_v10 = vadd.f32 1.0, %v58_v9 }
  0xb1   :  { %59 = vrcp.f32 %v46_v10 }
  0xbe   :  { %v60_v11 = vpop.eup %59 }
  0xbf   :  { %49 = vst.msk [vmem:[%s119_s3] sm:$0xff] %vm48_vm1, %v60_v11 }
  0xc0   :  { %54 = vsyncpa [#allocation4], 1 }

</bundles_post_ra>
